<compile_context>
chip_gen: v6e
topology: v6e:2x2x1
jax: 0.10.0
libtpu: 0.0.40
codegen_flags: <defaults>
</compile_context>

<pallas_src>
import jax
import jax.numpy as jnp
from jax.experimental import pallas as pl
from jax.experimental.pallas import tpu as pltpu

WIDTH = 128
IN_DIM = 28 * 28          # 784
IN_PAD = 896              # 7 * 128, zero-padded K for the first layer
OUT_DIM = 10
OUT_PAD = 128             # lane-dense output block, sliced to 10 in the wrapper
N_HIDDEN = 7              # seven Linear(128,128)+Logish blocks after the first layer


def _round_up(x, m):
    return ((x + m - 1) // m) * m


def _logish(v):
    # v is f32. sigmoid via EUP exp + approx reciprocal, then log1p (EUP).
    s = pl.reciprocal(1.0 + jnp.exp(-v), approx=True)
    return v * jnp.log1p(s)


def mlp_logish_kernel(x_ref, w1_ref, b1_ref, wh_ref, bh_ref, wo_ref, bo_ref, o_ref):
    # x_ref:  (TB, 896)         bf16  VMEM (batch-tiled, pipelined)
    # w1_ref: (896, 128)        bf16  VMEM (resident)
    # b1_ref: (1, 128)          f32   VMEM (resident)
    # wh_ref: (7, 128, 128)     bf16  VMEM (resident)
    # bh_ref: (7, 1, 128)       f32   VMEM (resident)
    # wo_ref: (128, 128)        bf16  VMEM (resident, zero-padded cols 10..127)
    # bo_ref: (1, 128)          f32   VMEM (resident, zero-padded)
    # o_ref:  (TB, 128)         f32   VMEM
    x = x_ref[...]

    h = jnp.dot(x, w1_ref[...], preferred_element_type=jnp.float32) + b1_ref[...]
    h = _logish(h)

    # Fixed trip count -> static unroll (static VMEM indices, full LLO visibility).
    for i in range(N_HIDDEN):
        h = jnp.dot(h.astype(jnp.bfloat16), wh_ref[i],
                    preferred_element_type=jnp.float32) + bh_ref[i]
        h = _logish(h)

    out = jnp.dot(h.astype(jnp.bfloat16), wo_ref[...],
                  preferred_element_type=jnp.float32) + bo_ref[...]
    o_ref[...] = out.astype(o_ref.dtype)


def simple_mlp_logish(x_nchw, params, *, tile_b=256):
    """x_nchw: (B, 1, 28, 28) float32. Returns (B, 10) float32."""
    B = x_nchw.shape[0]
    w1, b1, wh, bh, wo, bo = params

    # Flatten (row-major, matches nn.Flatten), pad K to 896.
    x_flat = x_nchw.reshape(B, IN_DIM)
    x_flat = jnp.pad(x_flat, ((0, 0), (0, IN_PAD - IN_DIM)))

    # Batch tile: multiple of 8 sublanes, capped at tile_b; pad B to a multiple of TB.
    TB = min(tile_b, _round_up(B, 8))
    B_pad = _round_up(B, TB)
    if B_pad != B:
        x_flat = jnp.pad(x_flat, ((0, B_pad - B), (0, 0)))
    x_bf16 = x_flat.astype(jnp.bfloat16)

    # Weights -> bf16 (MXU-native), biases stay f32 (added after f32 accumulation).
    w1_p = jnp.pad(w1, ((0, IN_PAD - IN_DIM), (0, 0))).astype(jnp.bfloat16)
    wh_b = wh.astype(jnp.bfloat16)
    wo_p = jnp.pad(wo, ((0, 0), (0, OUT_PAD - OUT_DIM))).astype(jnp.bfloat16)
    bo_p = jnp.pad(bo, ((0, 0), (0, OUT_PAD - OUT_DIM)))

    grid = (B_pad // TB,)
    out = pl.pallas_call(
        mlp_logish_kernel,
        out_shape=jax.ShapeDtypeStruct((B_pad, OUT_PAD), jnp.float32),
        grid=grid,
        in_specs=[
            pl.BlockSpec((TB, IN_PAD), lambda i: (i, 0)),                # x tile
            pl.BlockSpec((IN_PAD, WIDTH), lambda i: (0, 0)),             # w1 resident
            pl.BlockSpec((1, WIDTH), lambda i: (0, 0)),                  # b1 resident
            pl.BlockSpec((N_HIDDEN, WIDTH, WIDTH), lambda i: (0, 0, 0)), # wh resident
            pl.BlockSpec((N_HIDDEN, 1, WIDTH), lambda i: (0, 0, 0)),     # bh resident
            pl.BlockSpec((WIDTH, OUT_PAD), lambda i: (0, 0)),            # wo resident
            pl.BlockSpec((1, OUT_PAD), lambda i: (0, 0)),                # bo resident
        ],
        out_specs=pl.BlockSpec((TB, OUT_PAD), lambda i: (i, 0)),
        compiler_params=pltpu.CompilerParams(
            dimension_semantics=("parallel",),
            vmem_limit_bytes=32 << 20,
        ),
    )(x_bf16, w1_p, b1, wh_b, bh, wo_p, bo_p)

    return out[:B, :OUT_DIM]


def init_params(key):
    """Deterministic synthetic parameters (f32, torch-equivalent semantics).

    Weights are stored transposed vs torch, i.e. (in_dim, out_dim), so the
    kernel computes y = x @ W + b, matching torch's y = x @ W_t.T + b.
    """
    ks = jax.random.split(key, 6)
    scale1 = 1.0 / jnp.sqrt(IN_DIM)
    scaleh = 1.0 / jnp.sqrt(WIDTH)

    w1 = jax.random.uniform(ks[0], (IN_DIM, WIDTH), jnp.float32, -scale1, scale1)
    b1 = jax.random.uniform(ks[1], (1, WIDTH), jnp.float32, -scale1, scale1)

    wh = jax.random.uniform(ks[2], (N_HIDDEN, WIDTH, WIDTH), jnp.float32, -scaleh, scaleh)
    bh = jax.random.uniform(ks[3], (N_HIDDEN, 1, WIDTH), jnp.float32, -scaleh, scaleh)

    wo = jax.random.uniform(ks[4], (WIDTH, OUT_DIM), jnp.float32, -scaleh, scaleh)
    bo = jax.random.uniform(ks[5], (1, OUT_DIM), jnp.float32, -scaleh, scaleh)

    return (w1, b1, wh, bh, wo, bo)


def reference_forward(x_nchw, params):
    """Pure-JAX f32 reference mirroring the PyTorch module exactly."""
    w1, b1, wh, bh, wo, bo = params

    def logish(v):
        return v * jnp.log(1.0 + jax.nn.sigmoid(v))

    h = x_nchw.reshape(x_nchw.shape[0], IN_DIM)
    h = logish(h @ w1 + b1)
    for i in range(N_HIDDEN):
        h = logish(h @ wh[i] + bh[i])
    return h @ wo + bo


if __name__ == "__main__":
    key = jax.random.PRNGKey(0)
    k_x, k_p = jax.random.split(key)

    B = 8  # small batch for the smoke test; kernel tiles/pads any B
    x = jax.random.normal(k_x, (B, 1, 28, 28), dtype=jnp.float32)
    params = init_params(k_p)

    out = simple_mlp_logish(x, params)
    out = jax.block_until_ready(out)

    ref = reference_forward(x, params)
    assert out.shape == (B, OUT_DIM)
    # bf16 weights/activations with f32 accumulation -> relaxed tolerance vs f32 ref.
    assert jnp.allclose(out, ref, atol=3e-2, rtol=3e-2), (
        "mismatch vs reference: max abs diff = "
        f"{float(jnp.max(jnp.abs(out - ref)))}"
    )

    print("KERNEL_OK")
</pallas_src>

<mosaic_0001>
module attributes {stable_mosaic.version = 11 : i64} {
  func.func @mlp_logish_kernel(%arg0: i32, %arg1: memref<8x896xbf16, #tpu.memory_space<vmem>>, %arg2: memref<896x128xbf16, #tpu.memory_space<vmem>>, %arg3: memref<1x128xf32, #tpu.memory_space<vmem>>, %arg4: memref<7x128x128xbf16, #tpu.memory_space<vmem>>, %arg5: memref<7x1x128xf32, #tpu.memory_space<vmem>>, %arg6: memref<128x128xbf16, #tpu.memory_space<vmem>>, %arg7: memref<1x128xf32, #tpu.memory_space<vmem>>, %arg8: memref<8x128xf32, #tpu.memory_space<vmem>>) attributes {dimension_semantics = [#tpu.dimension_semantics<parallel>], iteration_bounds = array<i64: 1>, scalar_prefetch = 0 : i64, scratch_operands = 0 : i64, tpu.core_type = #tpu.core_type<tc>, window_params = [{transform_indices = @transform_0, window_bounds = array<i64: 8, 896>}, {pipeline_mode = #tpu.pipeline_mode<synchronous>, transform_indices = @transform_1, window_bounds = array<i64: 896, 128>}, {pipeline_mode = #tpu.pipeline_mode<synchronous>, transform_indices = @transform_2, window_bounds = array<i64: 1, 128>}, {pipeline_mode = #tpu.pipeline_mode<synchronous>, transform_indices = @transform_3, window_bounds = array<i64: 7, 128, 128>}, {pipeline_mode = #tpu.pipeline_mode<synchronous>, transform_indices = @transform_4, window_bounds = array<i64: 7, 1, 128>}, {pipeline_mode = #tpu.pipeline_mode<synchronous>, transform_indices = @transform_5, window_bounds = array<i64: 128, 128>}, {pipeline_mode = #tpu.pipeline_mode<synchronous>, transform_indices = @transform_6, window_bounds = array<i64: 1, 128>}, {transform_indices = @transform_7, window_bounds = array<i64: 8, 128>}]} {
    %c0 = arith.constant 0 : index
    %c0_0 = arith.constant 0 : index
    %0 = vector.load %arg1[%c0, %c0_0] : memref<8x896xbf16, #tpu.memory_space<vmem>>, vector<8x896xbf16>
    %c0_1 = arith.constant 0 : index
    %c0_2 = arith.constant 0 : index
    %1 = vector.load %arg2[%c0_1, %c0_2] : memref<896x128xbf16, #tpu.memory_space<vmem>>, vector<896x128xbf16>
    %cst = arith.constant dense<0.000000e+00> : vector<8x128xf32>
    %2 = tpu.matmul %0, %1, %cst {dimension_numbers = #tpu.dot_dimension_numbers<[1], [0], [0], [1], [0, 0, 1, 1], [], []>} : vector<8x896xbf16>, vector<896x128xbf16>, vector<8x128xf32> -> vector<8x128xf32>
    %c0_3 = arith.constant 0 : index
    %c0_4 = arith.constant 0 : index
    %3 = vector.load %arg3[%c0_3, %c0_4] : memref<1x128xf32, #tpu.memory_space<vmem>>, vector<1x128xf32>
    %4 = vector.broadcast %3 : vector<1x128xf32> to vector<8x128xf32>
    %5 = arith.addf %2, %4 : vector<8x128xf32>
    %cst_5 = arith.constant 0.000000e+00 : f32
    %6 = vector.broadcast %cst_5 : f32 to vector<8x128xf32>
    %7 = arith.subf %6, %5 : vector<8x128xf32>
    %8 = math.exp %7 : vector<8x128xf32>
    %cst_6 = arith.constant 1.000000e+00 : f32
    %9 = vector.broadcast %cst_6 : f32 to vector<8x128xf32>
    %10 = arith.addf %9, %8 : vector<8x128xf32>
    %11 = tpu.reciprocal %10 {approx = true} : vector<8x128xf32> -> vector<8x128xf32>
    %12 = math.log1p %11 : vector<8x128xf32>
    %13 = arith.mulf %5, %12 : vector<8x128xf32>
    %14 = arith.truncf %13 : vector<8x128xf32> to vector<8x128xbf16>
    %c0_7 = arith.constant 0 : index
    %c0_8 = arith.constant 0 : index
    %c0_9 = arith.constant 0 : index
    %15 = vector.load %arg4[%c0_7, %c0_8, %c0_9] : memref<7x128x128xbf16, #tpu.memory_space<vmem>>, vector<1x128x128xbf16>
    %16 = vector.shape_cast %15 : vector<1x128x128xbf16> to vector<128x128xbf16>
    %cst_10 = arith.constant dense<0.000000e+00> : vector<8x128xf32>
    %17 = tpu.matmul %14, %16, %cst_10 {dimension_numbers = #tpu.dot_dimension_numbers<[1], [0], [0], [1], [0, 0, 1, 1], [], []>} : vector<8x128xbf16>, vector<128x128xbf16>, vector<8x128xf32> -> vector<8x128xf32>
    %c0_11 = arith.constant 0 : index
    %c0_12 = arith.constant 0 : index
    %c0_13 = arith.constant 0 : index
    %18 = vector.load %arg5[%c0_11, %c0_12, %c0_13] : memref<7x1x128xf32, #tpu.memory_space<vmem>>, vector<1x1x128xf32>
    %19 = vector.shape_cast %18 : vector<1x1x128xf32> to vector<1x128xf32>
    %20 = vector.broadcast %19 : vector<1x128xf32> to vector<8x128xf32>
    %21 = arith.addf %17, %20 : vector<8x128xf32>
    %cst_14 = arith.constant 0.000000e+00 : f32
    %22 = vector.broadcast %cst_14 : f32 to vector<8x128xf32>
    %23 = arith.subf %22, %21 : vector<8x128xf32>
    %24 = math.exp %23 : vector<8x128xf32>
    %cst_15 = arith.constant 1.000000e+00 : f32
    %25 = vector.broadcast %cst_15 : f32 to vector<8x128xf32>
    %26 = arith.addf %25, %24 : vector<8x128xf32>
    %27 = tpu.reciprocal %26 {approx = true} : vector<8x128xf32> -> vector<8x128xf32>
    %28 = math.log1p %27 : vector<8x128xf32>
    %29 = arith.mulf %21, %28 : vector<8x128xf32>
    %30 = arith.truncf %29 : vector<8x128xf32> to vector<8x128xbf16>
    %c1 = arith.constant 1 : index
    %c0_16 = arith.constant 0 : index
    %c0_17 = arith.constant 0 : index
    %31 = vector.load %arg4[%c1, %c0_16, %c0_17] : memref<7x128x128xbf16, #tpu.memory_space<vmem>>, vector<1x128x128xbf16>
    %32 = vector.shape_cast %31 : vector<1x128x128xbf16> to vector<128x128xbf16>
    %cst_18 = arith.constant dense<0.000000e+00> : vector<8x128xf32>
    %33 = tpu.matmul %30, %32, %cst_18 {dimension_numbers = #tpu.dot_dimension_numbers<[1], [0], [0], [1], [0, 0, 1, 1], [], []>} : vector<8x128xbf16>, vector<128x128xbf16>, vector<8x128xf32> -> vector<8x128xf32>
    %c1_19 = arith.constant 1 : index
    %c0_20 = arith.constant 0 : index
    %c0_21 = arith.constant 0 : index
    %34 = vector.load %arg5[%c1_19, %c0_20, %c0_21] : memref<7x1x128xf32, #tpu.memory_space<vmem>>, vector<1x1x128xf32>
    %35 = vector.shape_cast %34 : vector<1x1x128xf32> to vector<1x128xf32>
    %36 = vector.broadcast %35 : vector<1x128xf32> to vector<8x128xf32>
    %37 = arith.addf %33, %36 : vector<8x128xf32>
    %cst_22 = arith.constant 0.000000e+00 : f32
    %38 = vector.broadcast %cst_22 : f32 to vector<8x128xf32>
    %39 = arith.subf %38, %37 : vector<8x128xf32>
    %40 = math.exp %39 : vector<8x128xf32>
    %cst_23 = arith.constant 1.000000e+00 : f32
    %41 = vector.broadcast %cst_23 : f32 to vector<8x128xf32>
    %42 = arith.addf %41, %40 : vector<8x128xf32>
    %43 = tpu.reciprocal %42 {approx = true} : vector<8x128xf32> -> vector<8x128xf32>
    %44 = math.log1p %43 : vector<8x128xf32>
    %45 = arith.mulf %37, %44 : vector<8x128xf32>
    %46 = arith.truncf %45 : vector<8x128xf32> to vector<8x128xbf16>
    %c2 = arith.constant 2 : index
    %c0_24 = arith.constant 0 : index
    %c0_25 = arith.constant 0 : index
    %47 = vector.load %arg4[%c2, %c0_24, %c0_25] : memref<7x128x128xbf16, #tpu.memory_space<vmem>>, vector<1x128x128xbf16>
    %48 = vector.shape_cast %47 : vector<1x128x128xbf16> to vector<128x128xbf16>
    %cst_26 = arith.constant dense<0.000000e+00> : vector<8x128xf32>
    %49 = tpu.matmul %46, %48, %cst_26 {dimension_numbers = #tpu.dot_dimension_numbers<[1], [0], [0], [1], [0, 0, 1, 1], [], []>} : vector<8x128xbf16>, vector<128x128xbf16>, vector<8x128xf32> -> vector<8x128xf32>
    %c2_27 = arith.constant 2 : index
    %c0_28 = arith.constant 0 : index
    %c0_29 = arith.constant 0 : index
    %50 = vector.load %arg5[%c2_27, %c0_28, %c0_29] : memref<7x1x128xf32, #tpu.memory_space<vmem>>, vector<1x1x128xf32>
    %51 = vector.shape_cast %50 : vector<1x1x128xf32> to vector<1x128xf32>
    %52 = vector.broadcast %51 : vector<1x128xf32> to vector<8x128xf32>
    %53 = arith.addf %49, %52 : vector<8x128xf32>
    %cst_30 = arith.constant 0.000000e+00 : f32
    %54 = vector.broadcast %cst_30 : f32 to vector<8x128xf32>
    %55 = arith.subf %54, %53 : vector<8x128xf32>
    %56 = math.exp %55 : vector<8x128xf32>
    %cst_31 = arith.constant 1.000000e+00 : f32
    %57 = vector.broadcast %cst_31 : f32 to vector<8x128xf32>
    %58 = arith.addf %57, %56 : vector<8x128xf32>
    %59 = tpu.reciprocal %58 {approx = true} : vector<8x128xf32> -> vector<8x128xf32>
    %60 = math.log1p %59 : vector<8x128xf32>
    %61 = arith.mulf %53, %60 : vector<8x128xf32>
    %62 = arith.truncf %61 : vector<8x128xf32> to vector<8x128xbf16>
    %c3 = arith.constant 3 : index
    %c0_32 = arith.constant 0 : index
    %c0_33 = arith.constant 0 : index
    %63 = vector.load %arg4[%c3, %c0_32, %c0_33] : memref<7x128x128xbf16, #tpu.memory_space<vmem>>, vector<1x128x128xbf16>
    %64 = vector.shape_cast %63 : vector<1x128x128xbf16> to vector<128x128xbf16>
    %cst_34 = arith.constant dense<0.000000e+00> : vector<8x128xf32>
    %65 = tpu.matmul %62, %64, %cst_34 {dimension_numbers = #tpu.dot_dimension_numbers<[1], [0], [0], [1], [0, 0, 1, 1], [], []>} : vector<8x128xbf16>, vector<128x128xbf16>, vector<8x128xf32> -> vector<8x128xf32>
    %c3_35 = arith.constant 3 : index
    %c0_36 = arith.constant 0 : index
    %c0_37 = arith.constant 0 : index
    %66 = vector.load %arg5[%c3_35, %c0_36, %c0_37] : memref<7x1x128xf32, #tpu.memory_space<vmem>>, vector<1x1x128xf32>
    %67 = vector.shape_cast %66 : vector<1x1x128xf32> to vector<1x128xf32>
    %68 = vector.broadcast %67 : vector<1x128xf32> to vector<8x128xf32>
    %69 = arith.addf %65, %68 : vector<8x128xf32>
    %cst_38 = arith.constant 0.000000e+00 : f32
    %70 = vector.broadcast %cst_38 : f32 to vector<8x128xf32>
    %71 = arith.subf %70, %69 : vector<8x128xf32>
    %72 = math.exp %71 : vector<8x128xf32>
    %cst_39 = arith.constant 1.000000e+00 : f32
    %73 = vector.broadcast %cst_39 : f32 to vector<8x128xf32>
    %74 = arith.addf %73, %72 : vector<8x128xf32>
    %75 = tpu.reciprocal %74 {approx = true} : vector<8x128xf32> -> vector<8x128xf32>
    %76 = math.log1p %75 : vector<8x128xf32>
    %77 = arith.mulf %69, %76 : vector<8x128xf32>
    %78 = arith.truncf %77 : vector<8x128xf32> to vector<8x128xbf16>
    %c4 = arith.constant 4 : index
    %c0_40 = arith.constant 0 : index
    %c0_41 = arith.constant 0 : index
    %79 = vector.load %arg4[%c4, %c0_40, %c0_41] : memref<7x128x128xbf16, #tpu.memory_space<vmem>>, vector<1x128x128xbf16>
    %80 = vector.shape_cast %79 : vector<1x128x128xbf16> to vector<128x128xbf16>
    %cst_42 = arith.constant dense<0.000000e+00> : vector<8x128xf32>
    %81 = tpu.matmul %78, %80, %cst_42 {dimension_numbers = #tpu.dot_dimension_numbers<[1], [0], [0], [1], [0, 0, 1, 1], [], []>} : vector<8x128xbf16>, vector<128x128xbf16>, vector<8x128xf32> -> vector<8x128xf32>
    %c4_43 = arith.constant 4 : index
    %c0_44 = arith.constant 0 : index
    %c0_45 = arith.constant 0 : index
    %82 = vector.load %arg5[%c4_43, %c0_44, %c0_45] : memref<7x1x128xf32, #tpu.memory_space<vmem>>, vector<1x1x128xf32>
    %83 = vector.shape_cast %82 : vector<1x1x128xf32> to vector<1x128xf32>
    %84 = vector.broadcast %83 : vector<1x128xf32> to vector<8x128xf32>
    %85 = arith.addf %81, %84 : vector<8x128xf32>
    %cst_46 = arith.constant 0.000000e+00 : f32
    %86 = vector.broadcast %cst_46 : f32 to vector<8x128xf32>
    %87 = arith.subf %86, %85 : vector<8x128xf32>
    %88 = math.exp %87 : vector<8x128xf32>
    %cst_47 = arith.constant 1.000000e+00 : f32
    %89 = vector.broadcast %cst_47 : f32 to vector<8x128xf32>
    %90 = arith.addf %89, %88 : vector<8x128xf32>
    %91 = tpu.reciprocal %90 {approx = true} : vector<8x128xf32> -> vector<8x128xf32>
    %92 = math.log1p %91 : vector<8x128xf32>
    %93 = arith.mulf %85, %92 : vector<8x128xf32>
    %94 = arith.truncf %93 : vector<8x128xf32> to vector<8x128xbf16>
    %c5 = arith.constant 5 : index
    %c0_48 = arith.constant 0 : index
    %c0_49 = arith.constant 0 : index
    %95 = vector.load %arg4[%c5, %c0_48, %c0_49] : memref<7x128x128xbf16, #tpu.memory_space<vmem>>, vector<1x128x128xbf16>
    %96 = vector.shape_cast %95 : vector<1x128x128xbf16> to vector<128x128xbf16>
    %cst_50 = arith.constant dense<0.000000e+00> : vector<8x128xf32>
    %97 = tpu.matmul %94, %96, %cst_50 {dimension_numbers = #tpu.dot_dimension_numbers<[1], [0], [0], [1], [0, 0, 1, 1], [], []>} : vector<8x128xbf16>, vector<128x128xbf16>, vector<8x128xf32> -> vector<8x128xf32>
    %c5_51 = arith.constant 5 : index
    %c0_52 = arith.constant 0 : index
    %c0_53 = arith.constant 0 : index
    %98 = vector.load %arg5[%c5_51, %c0_52, %c0_53] : memref<7x1x128xf32, #tpu.memory_space<vmem>>, vector<1x1x128xf32>
    %99 = vector.shape_cast %98 : vector<1x1x128xf32> to vector<1x128xf32>
    %100 = vector.broadcast %99 : vector<1x128xf32> to vector<8x128xf32>
    %101 = arith.addf %97, %100 : vector<8x128xf32>
    %cst_54 = arith.constant 0.000000e+00 : f32
    %102 = vector.broadcast %cst_54 : f32 to vector<8x128xf32>
    %103 = arith.subf %102, %101 : vector<8x128xf32>
    %104 = math.exp %103 : vector<8x128xf32>
    %cst_55 = arith.constant 1.000000e+00 : f32
    %105 = vector.broadcast %cst_55 : f32 to vector<8x128xf32>
    %106 = arith.addf %105, %104 : vector<8x128xf32>
    %107 = tpu.reciprocal %106 {approx = true} : vector<8x128xf32> -> vector<8x128xf32>
    %108 = math.log1p %107 : vector<8x128xf32>
    %109 = arith.mulf %101, %108 : vector<8x128xf32>
    %110 = arith.truncf %109 : vector<8x128xf32> to vector<8x128xbf16>
    %c6 = arith.constant 6 : index
    %c0_56 = arith.constant 0 : index
    %c0_57 = arith.constant 0 : index
    %111 = vector.load %arg4[%c6, %c0_56, %c0_57] : memref<7x128x128xbf16, #tpu.memory_space<vmem>>, vector<1x128x128xbf16>
    %112 = vector.shape_cast %111 : vector<1x128x128xbf16> to vector<128x128xbf16>
    %cst_58 = arith.constant dense<0.000000e+00> : vector<8x128xf32>
    %113 = tpu.matmul %110, %112, %cst_58 {dimension_numbers = #tpu.dot_dimension_numbers<[1], [0], [0], [1], [0, 0, 1, 1], [], []>} : vector<8x128xbf16>, vector<128x128xbf16>, vector<8x128xf32> -> vector<8x128xf32>
    %c6_59 = arith.constant 6 : index
    %c0_60 = arith.constant 0 : index
    %c0_61 = arith.constant 0 : index
    %114 = vector.load %arg5[%c6_59, %c0_60, %c0_61] : memref<7x1x128xf32, #tpu.memory_space<vmem>>, vector<1x1x128xf32>
    %115 = vector.shape_cast %114 : vector<1x1x128xf32> to vector<1x128xf32>
    %116 = vector.broadcast %115 : vector<1x128xf32> to vector<8x128xf32>
    %117 = arith.addf %113, %116 : vector<8x128xf32>
    %cst_62 = arith.constant 0.000000e+00 : f32
    %118 = vector.broadcast %cst_62 : f32 to vector<8x128xf32>
    %119 = arith.subf %118, %117 : vector<8x128xf32>
    %120 = math.exp %119 : vector<8x128xf32>
    %cst_63 = arith.constant 1.000000e+00 : f32
    %121 = vector.broadcast %cst_63 : f32 to vector<8x128xf32>
    %122 = arith.addf %121, %120 : vector<8x128xf32>
    %123 = tpu.reciprocal %122 {approx = true} : vector<8x128xf32> -> vector<8x128xf32>
    %124 = math.log1p %123 : vector<8x128xf32>
    %125 = arith.mulf %117, %124 : vector<8x128xf32>
    %126 = arith.truncf %125 : vector<8x128xf32> to vector<8x128xbf16>
    %c0_64 = arith.constant 0 : index
    %c0_65 = arith.constant 0 : index
    %127 = vector.load %arg6[%c0_64, %c0_65] : memref<128x128xbf16, #tpu.memory_space<vmem>>, vector<128x128xbf16>
    %cst_66 = arith.constant dense<0.000000e+00> : vector<8x128xf32>
    %128 = tpu.matmul %126, %127, %cst_66 {dimension_numbers = #tpu.dot_dimension_numbers<[1], [0], [0], [1], [0, 0, 1, 1], [], []>} : vector<8x128xbf16>, vector<128x128xbf16>, vector<8x128xf32> -> vector<8x128xf32>
    %c0_67 = arith.constant 0 : index
    %c0_68 = arith.constant 0 : index
    %129 = vector.load %arg7[%c0_67, %c0_68] : memref<1x128xf32, #tpu.memory_space<vmem>>, vector<1x128xf32>
    %130 = vector.broadcast %129 : vector<1x128xf32> to vector<8x128xf32>
    %131 = arith.addf %128, %130 : vector<8x128xf32>
    %c0_69 = arith.constant 0 : index
    %c0_70 = arith.constant 0 : index
    %132 = vector.load %arg8[%c0_69, %c0_70] : memref<8x128xf32, #tpu.memory_space<vmem>>, vector<8x128xf32>
    tpu.vector_store %arg8[%c0_69, %c0_70], %131 {strides = array<i32>} : memref<8x128xf32, #tpu.memory_space<vmem>>, vector<8x128xf32>,
    return
  }
  func.func @transform_0(%arg0: i32) -> (i32, i32) {
    %c0_i32 = arith.constant 0 : i32
    %c0_i32_0 = arith.constant 0 : i32
    return %arg0, %c0_i32 : i32, i32
  }
  func.func @transform_1(%arg0: i32) -> (i32, i32) {
    %c0_i32 = arith.constant 0 : i32
    %c0_i32_0 = arith.constant 0 : i32
    %c0_i32_1 = arith.constant 0 : i32
    return %c0_i32, %c0_i32_0 : i32, i32
  }
  func.func @transform_2(%arg0: i32) -> (i32, i32) {
    %c0_i32 = arith.constant 0 : i32
    %c0_i32_0 = arith.constant 0 : i32
    %c0_i32_1 = arith.constant 0 : i32
    return %c0_i32, %c0_i32_0 : i32, i32
  }
  func.func @transform_3(%arg0: i32) -> (i32, i32, i32) {
    %c0_i32 = arith.constant 0 : i32
    %c0_i32_0 = arith.constant 0 : i32
    %c0_i32_1 = arith.constant 0 : i32
    %c0_i32_2 = arith.constant 0 : i32
    return %c0_i32, %c0_i32_0, %c0_i32_1 : i32, i32, i32
  }
  func.func @transform_4(%arg0: i32) -> (i32, i32, i32) {
    %c0_i32 = arith.constant 0 : i32
    %c0_i32_0 = arith.constant 0 : i32
    %c0_i32_1 = arith.constant 0 : i32
    %c0_i32_2 = arith.constant 0 : i32
    return %c0_i32, %c0_i32_0, %c0_i32_1 : i32, i32, i32
  }
  func.func @transform_5(%arg0: i32) -> (i32, i32) {
    %c0_i32 = arith.constant 0 : i32
    %c0_i32_0 = arith.constant 0 : i32
    %c0_i32_1 = arith.constant 0 : i32
    return %c0_i32, %c0_i32_0 : i32, i32
  }
  func.func @transform_6(%arg0: i32) -> (i32, i32) {
    %c0_i32 = arith.constant 0 : i32
    %c0_i32_0 = arith.constant 0 : i32
    %c0_i32_1 = arith.constant 0 : i32
    return %c0_i32, %c0_i32_0 : i32, i32
  }
  func.func @transform_7(%arg0: i32) -> (i32, i32) {
    %c0_i32 = arith.constant 0 : i32
    %c0_i32_0 = arith.constant 0 : i32
    return %arg0, %c0_i32 : i32, i32
  }
}

</mosaic_0001>

<bundles_post_ra>
// kernel: tpu_custom_call.1
= control target key start
LH: loop header
LB: loop body
LE: loop exit
PB: predicated region body
PF: predicated region fallthrough
CT: control target
= control target key end

     0   :  { %12 = vsyncpa [#allocation3], 0  ;;  %s2755_s0 = inlined_call_operand.hbm [shape: bf16[8,896], index: 0, kind: input, shape index: {}]   ;;  %s2756_s1 = inlined_call_operand.hbm [shape: bf16[896,128], index: 1, kind: input, shape index: {}]   ;;  %s2757_s2 = inlined_call_operand.hbm [shape: f32[1,128], index: 2, kind: input, shape index: {}]   ;;  %s2758_s3 = inlined_call_operand.hbm [shape: bf16[7,128,128], index: 3, kind: input, shape index: {}]   ;;  %s2759_s4 = inlined_call_operand.vmem [shape: f32[7,1,128], index: 4, kind: input, shape index: {}]   ;;  %s2760_s5 = inlined_call_operand.hbm [shape: bf16[128,128], index: 5, kind: input, shape index: {}]   ;;  %s2761_s6 = inlined_call_operand.vmem [shape: f32[1,128], index: 6, kind: input, shape index: {}]   ;;  %s2762_s7 = inlined_call_operand.hbm [shape: f32[8,128], index: 7, kind: output, shape index: {}]  }
   0x1   :  { %13 = vsyncpa [#allocation6], 0 }
   0x2   :  { %14 = vsyncpa [#allocation9], 0 }
   0x3   :  { %15 = vsyncpa [#allocation4], 0  ;;  %s2564_s24 = smov [#allocation5]  }
   0x4   :  { %s31_s25 = sshll.u32 %s2564_s24, 4  ;;  %s32_s25 = int_to_ptr.vmem [resolvable:$true] %s31_s25 }
   0x5   :  { %s2444_s26 = scalar_lea.vmem %s32_s25, 7168  ;;  %p2449_p1 = scmp.lt.s32.totalorder %s32_s25, %s32_s25 }
   0x6   :  { %p2445_p0 = scmp.ne.s32.totalorder %s32_s25, %s2444_s26  ;;  %p2450_p2 = scmp.lt.s32.totalorder %s2444_s26, %s2444_s26 }
   0x8   :  { %p2451_p3 = por %p2450_p2, %p2449_p1 }
   0xa   :  { %p2452_p4 = pnand %p2451_p3, %p2445_p0 }
   0xc   :  { %2455 = shalt.err (!%p2452_p4)
}
   0xd   :  { %s2565_s27 = smov 64   ;;  %s2566_s28 = smov 4  }
   0xe   :  { %37 = dma.hbm_to_vmem [thread:$0]  %s2756_s1, 7168, %s32_s25, [#allocation6], %s2565_s27, %s2565_s27, %s2566_s28  }
   0xf   :  { %s2567_s8 = smov [#allocation8]   ;;  %s2568_s10 = smov [#allocation2]  }
  0x10   :  { %s53_s9 = sshll.u32 %s2567_s8, 4  ;;  %s22_s11 = sshll.u32 %s2568_s10, 4  ;;  %s54_s9 = int_to_ptr.vmem [resolvable:$true] %s53_s9  ;;  %s23_s11 = int_to_ptr.vmem [resolvable:$true] %s22_s11 }
  0x11   :  { %s2464_s12 = scalar_lea.vmem %s54_s9, 7168  ;;  %p2469_p6 = scmp.lt.s32.totalorder %s54_s9, %s54_s9 }
  0x12   :  { %p2465_p5 = scmp.ne.s32.totalorder %s54_s9, %s2464_s12  ;;  %p2470_p7 = scmp.lt.s32.totalorder %s2464_s12, %s2464_s12 }
  0x14   :  { %p2471_p8 = por %p2470_p7, %p2469_p6 }
  0x16   :  { %p2472_p9 = pnand %p2471_p8, %p2465_p5 }
  0x18   :  { %2475 = shalt.err (!%p2472_p9)
}
  0x19   :  { %59 = dma.hbm_to_vmem [thread:$0]  %s2758_s3, 7168, %s54_s9, [#allocation9], %s2565_s27, %s2565_s27, %s2566_s28  }
  0x1a   :  { %s2484_s1 = scalar_lea.vmem %s23_s11, 448  ;;  %p2489_p11 = scmp.lt.s32.totalorder %s23_s11, %s23_s11 }
  0x1b   :  { %p2485_p10 = scmp.ne.s32.totalorder %s23_s11, %s2484_s1  ;;  %p2490_p12 = scmp.lt.s32.totalorder %s2484_s1, %s2484_s1 }
  0x1d   :  { %p2491_p13 = por %p2490_p12, %p2489_p11 }
  0x1f   :  { %p2492_p0 = pnand %p2491_p13, %p2485_p10 }
  0x21   :  { %2495 = shalt.err (!%p2492_p0)
}
  0x22   :  { %25 = dma.hbm_to_vmem [thread:$0]  %s2755_s0, 448, %s23_s11, [#allocation3]  }
  0x23   :  { %s2569_s17 = smov [#allocation7]   ;;  %s2570_s19 = smov [#allocation10]  }
  0x24   :  { %s44_s18 = sshll.u32 %s2569_s17, 4  ;;  %s67_s20 = sshll.u32 %s2570_s19, 4  ;;  %s45_s18 = int_to_ptr.vmem [resolvable:$true] %s44_s18  ;;  %s68_s20 = int_to_ptr.vmem [resolvable:$true] %s67_s20 }
  0x25   :  { %s2504_s21 = scalar_lea.vmem %s45_s18, 16  ;;  %s2508_s3 = scalar_lea.vmem %s45_s18, 32 }
  0x26   :  { %p2505_p1 = scmp.ne.s32.totalorder %s45_s18, %s2504_s21  ;;  %p2509_p2 = scmp.lt.s32.totalorder %s45_s18, %s45_s18 }
  0x27   :  { %p2510_p3 = scmp.lt.s32.totalorder %s2508_s3, %s2504_s21 }
  0x29   :  { %p2511_p4 = por %p2510_p3, %p2509_p2 }
  0x2b   :  { %p2512_p5 = pnand %p2511_p4, %p2505_p1 }
  0x2d   :  { %2515 = shalt.err (!%p2512_p5)
}
  0x2e   :  { %47 = dma.hbm_to_vmem [thread:$0]  %s2757_s2, 16, %s45_s18, [#allocation6]  }
  0x2f   :  { %s2524_s24 = scalar_lea.vmem %s68_s20, 1024  ;;  %p2529_p7 = scmp.lt.s32.totalorder %s68_s20, %s68_s20 }
  0x30   :  { %p2525_p6 = scmp.ne.s32.totalorder %s68_s20, %s2524_s24  ;;  %p2530_p8 = scmp.lt.s32.totalorder %s2524_s24, %s2524_s24 }
  0x32   :  { %p2531_p9 = por %p2530_p8, %p2529_p7 }
  0x34   :  { %p2532_p10 = pnand %p2531_p9, %p2525_p6 }
  0x36   :  { %2535 = shalt.err (!%p2532_p10)
}
  0x37   :  { %73 = dma.hbm_to_vmem [thread:$0]  %s2760_s5, 1024, %s68_s20, [#allocation9], %s2565_s27, %s2565_s27, %s2566_s28  }
  0x38   :  { %2556 = dma.done.wait [#allocation3], 448  }
  0x39   :  { %2557 = vsyncadd [#allocation3], 4294966848 }
  0x3a   :  { %2558 = dma.done.wait [#allocation6], 7184  }
  0x3b   :  { %2559 = vsyncadd [#allocation6], 4294960112 }
  0x3c   :  { %2560 = dma.done.wait [#allocation9], 8192  }
  0x3d   :  { %2561 = vsyncadd [#allocation9], 4294959104  ;;  %v2261_v0 = vld [vmem:[#allocation5 + $0x78] sm:$0xff]   ;;  %v2265_v4 = vld [vmem:[#allocation5 + $0x70] sm:$0xff]   ;;  %v2571_v39 = vmov 0.0   ;;  %vm2572_vm0 = vmmov 0  }
  0x3e   :  { %v2262_v1 = vld [vmem:[#allocation5 + $0xf8] sm:$0xff]   ;;  %1924 = vmatprep.subr.bf16.mxu0 %v2261_v0  ;;  %v2266_v5 = vld [vmem:[#allocation5 + $0xf0] sm:$0xff]   ;;  %v2269_v8 = vld [vmem:[#allocation5 + $0x68] sm:$0xff]   ;;  %s2573_s15 = smov [#allocation11]  }
  0x3f   :  { %v2263_v2 = vld [vmem:[#allocation5 + $0x38] sm:$0xff]   ;;  %1946 = vmatprep.subr.bf16.mxu1 %v2262_v1  ;;  %v2267_v6 = vld [vmem:[#allocation5 + $0x30] sm:$0xff]   ;;  %v2270_v9 = vld [vmem:[#allocation5 + $0xe8] sm:$0xff]   ;;  %s1771_s16 = sshll.u32 %s2573_s15, 4  ;;  %s1772_s16 = int_to_ptr.vmem [resolvable:$true] %s1771_s16 }
  0x40   :  { %v2264_v3 = vld [vmem:[#allocation5 + $0xb8] sm:$0xff]   ;;  %1925 = vmatpush3.bf16.msra.mxu0 %v2263_v2  ;;  %v2268_v7 = vld [vmem:[#allocation5 + $0xb0] sm:$0xff]   ;;  %v2271_v10 = vld [vmem:[#allocation5 + $0x28] sm:$0xff]   ;;  %s2536_s17 = scalar_lea.vmem %s1772_s16, 128  ;;  %p2541_p12 = scmp.lt.s32.totalorder %s1772_s16, %s1772_s16 }
  0x41   :  { %1947 = vmatpush3.bf16.msra.mxu1 %v2264_v3  ;;  %1926 = vmatprep.subr.bf16.mxu0 %v2265_v4  ;;  %v2272_v11 = vld [vmem:[#allocation5 + $0xa8] sm:$0xff]   ;;  %v2273_v12 = vld [vmem:[#allocation5 + $0x60] sm:$0xff]   ;;  %v2277_v16 = vld [vmem:[#allocation5 + $0x58] sm:$0xff]   ;;  %p2537_p11 = scmp.ne.s32.totalorder %s1772_s16, %s2536_s17  ;;  %p2542_p13 = scmp.lt.s32.totalorder %s2536_s17, %s2536_s17 }
  0x42   :  { %1948 = vmatprep.subr.bf16.mxu1 %v2266_v5  ;;  %v2274_v13 = vld [vmem:[#allocation5 + $0xe0] sm:$0xff]   ;;  %v2278_v17 = vld [vmem:[#allocation5 + $0xd8] sm:$0xff]   ;;  %v2281_v20 = vld [vmem:[#allocation5 + $0x50] sm:$0xff]  }
  0x43   :  { %v2275_v14 = vld [vmem:[#allocation5 + $0x20] sm:$0xff]   ;;  %v2279_v18 = vld [vmem:[#allocation5 + $0x18] sm:$0xff]   ;;  %v2282_v21 = vld [vmem:[#allocation5 + $0xd0] sm:$0xff]   ;;  %p2543_p0 = por %p2542_p13, %p2541_p12 }
  0x44   :  { %1927 = vmatpush3.bf16.msra.mxu0 %v2267_v6  ;;  %v2276_v15 = vld [vmem:[#allocation5 + $0xa0] sm:$0xff]   ;;  %v2280_v19 = vld [vmem:[#allocation5 + $0x98] sm:$0xff]   ;;  %v2283_v22 = vld [vmem:[#allocation5 + $0x10] sm:$0xff]  }
  0x45   :  { %1949 = vmatpush3.bf16.msra.mxu1 %v2268_v7  ;;  %1928 = vmatprep.subr.bf16.mxu0 %v2269_v8  ;;  %v2284_v23 = vld [vmem:[#allocation5 + $0x90] sm:$0xff]   ;;  %v2285_v24 = vld [vmem:[#allocation5 + $0x48] sm:$0xff]   ;;  %v2289_v28 = vld [vmem:[#allocation5 + $0x40] sm:$0xff]   ;;  %p2544_p1 = pnand %p2543_p0, %p2537_p11 }
  0x46   :  { %1950 = vmatprep.subr.bf16.mxu1 %v2270_v9  ;;  %v2286_v25 = vld [vmem:[#allocation5 + $0xc8] sm:$0xff]   ;;  %v2290_v29 = vld [vmem:[#allocation5 + $0xc0] sm:$0xff]   ;;  %v2297_v38 = vld [vmem:[#allocation5 + $0x178] sm:$0xff]  }
  0x47   :  { %v2287_v26 = vld [vmem:[#allocation5 + $0x8] sm:$0xff]   ;;  %v2291_v30 = vld [vmem:[#allocation5] sm:$0xff]   ;;  %v2298_v40 = vld [vmem:[#allocation5 + $0x138] sm:$0xff]  }
  0x48   :  { %1929 = vmatpush3.bf16.msra.mxu0 %v2271_v10  ;;  %v2288_v27 = vld [vmem:[#allocation5 + $0x88] sm:$0xff]   ;;  %v2292_v31 = vld [vmem:[#allocation5 + $0x80] sm:$0xff]   ;;  %v2299_v41 = vld [vmem:[#allocation5 + $0x1b8] sm:$0xff]  }
  0x49   :  { %1951 = vmatpush3.bf16.msra.mxu1 %v2272_v11  ;;  %1930 = vmatprep.subr.bf16.mxu0 %v2273_v12  ;;  %v92_v32 = vld [vmem:[#allocation2] sm:$0xff]  ;;  %v93_v33 = vld [vmem:[#allocation2 + $0x8] sm:$0xff]  ;;  %v2309_v51 = vld [vmem:[#allocation5 + $0x158] sm:$0xff]  }
  0x4a   :  { %1952 = vmatprep.subr.bf16.mxu1 %v2274_v13  ;;  %v1783_v34 = vcombine.low %v92_v32, %v92_v32  ;;  %v1784_v35 = vcombine.high %v92_v32, %v92_v32  ;;  %v1785_v36 = vcombine.low %v93_v33, %v93_v33  ;;  %v1786_v37 = vcombine.high %v93_v33, %v93_v33  ;;  %v2300_v42 = vld [vmem:[#allocation5 + $0x170] sm:$0xff]   ;;  %v2303_v45 = vld [vmem:[#allocation5 + $0x168] sm:$0xff]   ;;  %v2306_v48 = vld [vmem:[#allocation5 + $0x160] sm:$0xff]  }
  0x4b   :  { %v2301_v43 = vld [vmem:[#allocation5 + $0x130] sm:$0xff]   ;;  %v2304_v46 = vld [vmem:[#allocation5 + $0x128] sm:$0xff]   ;;  %v2307_v49 = vld [vmem:[#allocation5 + $0x120] sm:$0xff]  }
  0x4c   :  { %1931 = vmatpush3.bf16.msra.mxu0 %v2275_v14  ;;  %608 = vmatprep.mubr.bf16.mxu0 %v1784_v35  ;;  %v2302_v44 = vld [vmem:[#allocation5 + $0x1b0] sm:$0xff]   ;;  %v2305_v47 = vld [vmem:[#allocation5 + $0x1a8] sm:$0xff]   ;;  %v2308_v50 = vld [vmem:[#allocation5 + $0x1a0] sm:$0xff]  }
  0x4d   :  { %1953 = vmatpush3.bf16.msra.mxu1 %v2276_v15  ;;  %1932 = vmatprep.subr.bf16.mxu0 %v2277_v16  ;;  %v2310_v52 = vld [vmem:[#allocation5 + $0x118] sm:$0xff]   ;;  %v2312_v54 = vld [vmem:[#allocation5 + $0x150] sm:$0xff]   ;;  %v2315_v57 = vld [vmem:[#allocation5 + $0x148] sm:$0xff]  }
  0x4e   :  { %1954 = vmatprep.subr.bf16.mxu1 %v2278_v17  ;;  %648 = vmatprep.mubr.bf16.mxu1 %v1786_v37  ;;  %v2311_v53 = vld [vmem:[#allocation5 + $0x198] sm:$0xff]   ;;  %v2313_v55 = vld [vmem:[#allocation5 + $0x110] sm:$0xff]   ;;  %v2316_v58 = vld [vmem:[#allocation5 + $0x108] sm:$0xff]  }
  0x4f   :  { %v2314_v56 = vld [vmem:[#allocation5 + $0x190] sm:$0xff]   ;;  %v2317_v59 = vld [vmem:[#allocation5 + $0x188] sm:$0xff]   ;;  %v2318_v61 = vld [vmem:[#allocation5 + $0x140] sm:$0xff]  }
  0x50   :  { %1933 = vmatpush3.bf16.msra.mxu0 %v2279_v18  ;;  %v94_v60 = vld [vmem:[#allocation2 + $0x10] sm:$0xff]  ;;  %v2319_v63 = vld [vmem:[#allocation5 + $0x100] sm:$0xff]   ;;  %v2323_v1 = vld [vmem:[#allocation2 + $0x18] ss:$0 sps:$4 sm:$0xff]  }
  0x51   :  { %1955 = vmatpush3.bf16.msra.mxu1 %v2280_v19  ;;  %1934 = vmatprep.subr.bf16.mxu0 %v2281_v20  ;;  %v1788_v62 = vcombine.high %v94_v60, %v94_v60  ;;  %v2320_v0 = vld [vmem:[#allocation5 + $0x180] sm:$0xff]   ;;  %v1787_v2 = vcombine.low %v94_v60, %v94_v60  ;;  %v2325_v4 = vld [vmem:[#allocation8 + $0x30] sm:$0xff]   ;;  %v2326_v5 = vld [vmem:[#allocation8 + $0x28] sm:$0xff]  }
  0x52   :  { %1956 = vmatprep.subr.bf16.mxu1 %v2282_v21  ;;  %v2324_v3 = vld [vmem:[#allocation8 + $0x38] sm:$0xff]   ;;  %v2327_v6 = vld [vmem:[#allocation8 + $0x20] sm:$0xff]   ;;  %v2329_v8 = vld [vmem:[#allocation8 + $0x10] sm:$0xff]  }
  0x53   :  { %v2328_v7 = vld [vmem:[#allocation8 + $0x18] sm:$0xff]   ;;  %v2330_v9 = vld [vmem:[#allocation8 + $0x8] sm:$0xff]   ;;  %v2331_v10 = vld [vmem:[#allocation8] sm:$0xff]  }
  0x54   :  { %1935 = vmatpush3.bf16.msra.mxu0 %v2283_v22  ;;  %v1782_v20 = vld [vmem:[#allocation7] ss:$0 sm:$0xff] }
  0x55   :  { %1957 = vmatpush3.bf16.msra.mxu1 %v2284_v23  ;;  %1936 = vmatprep.subr.bf16.mxu0 %v2285_v24 }
  0x56   :  { %1958 = vmatprep.subr.bf16.mxu1 %v2286_v25 }
  0x58   :  { %1937 = vmatpush3.bf16.msra.mxu0 %v2287_v26 }
  0x59   :  { %1959 = vmatpush3.bf16.msra.mxu1 %v2288_v27  ;;  %1938 = vmatprep.subr.bf16.mxu0 %v2289_v28 }
  0x5a   :  { %1960 = vmatprep.subr.bf16.mxu1 %v2290_v29 }
  0x5c   :  { %1939 = vmatpush3.bf16.msra.mxu0 %v2291_v30 }
  0x5d   :  { %1961 = vmatpush3.bf16.msra.mxu1 %v2292_v31  ;;  %1968 = vmatprep.subr.bf16.mxu0 %v2297_v38 }
  0x5e   :  { %2071 = vmatprep.subr.bf16.mxu1 %v2571_v39 }
  0x5f   :  { %609 = vmatmul.mubr.bf16.vlgmr.msra.gmra.mxu0 %v1783_v34 }
  0x60   :  { %649 = vmatmul.mubr.bf16.vlgmr.msra.gmra.mxu1 %v1785_v36  ;;  %1969 = vmatpush3.bf16.msra.mxu0 %v2298_v40 }
  0x61   :  { %2072 = vmatpush3.bf16.msra.mxu1 %v2299_v41  ;;  %1970 = vmatprep.subr.bf16.mxu0 %v2300_v42 }
  0x62   :  { %2073 = vmatprep.subr.bf16.mxu1 %v2571_v39  ;;  %2087 = vmatprep.mubr.msk.bf16.mxu1 %vm2572_vm0, %v2571_v39 }
  0x63   :  { %688 = vmatprep.mubr.bf16.mxu0 %v1788_v62 }
  0x64   :  { %1971 = vmatpush3.bf16.msra.mxu0 %v2301_v43 }
  0x65   :  { %2074 = vmatpush3.bf16.msra.mxu1 %v2302_v44  ;;  %1972 = vmatprep.subr.bf16.mxu0 %v2303_v45 }
  0x66   :  { %2075 = vmatprep.subr.bf16.mxu1 %v2571_v39 }
  0x68   :  { %1973 = vmatpush3.bf16.msra.mxu0 %v2304_v46 }
  0x69   :  { %2076 = vmatpush3.bf16.msra.mxu1 %v2305_v47  ;;  %1974 = vmatprep.subr.bf16.mxu0 %v2306_v48 }
  0x6a   :  { %2077 = vmatprep.subr.bf16.mxu1 %v2571_v39 }
  0x6c   :  { %1975 = vmatpush3.bf16.msra.mxu0 %v2307_v49 }
  0x6d   :  { %2078 = vmatpush3.bf16.msra.mxu1 %v2308_v50  ;;  %1976 = vmatprep.subr.bf16.mxu0 %v2309_v51  ;;  %v2332_v51 = vld [vmem:[#allocation8 + $0x78] sm:$0xff]  }
  0x6e   :  { %2079 = vmatprep.subr.bf16.mxu1 %v2571_v39 }
  0x70   :  { %1977 = vmatpush3.bf16.msra.mxu0 %v2310_v52  ;;  %v2333_v52 = vld [vmem:[#allocation8 + $0x70] sm:$0xff]  }
  0x71   :  { %2080 = vmatpush3.bf16.msra.mxu1 %v2311_v53  ;;  %1978 = vmatprep.subr.bf16.mxu0 %v2312_v54  ;;  %v2334_v53 = vld [vmem:[#allocation8 + $0x68] sm:$0xff]   ;;  %v2335_v54 = vld [vmem:[#allocation8 + $0x60] sm:$0xff]  }
  0x72   :  { %2081 = vmatprep.subr.bf16.mxu1 %v2571_v39 }
  0x74   :  { %1979 = vmatpush3.bf16.msra.mxu0 %v2313_v55  ;;  %v2336_v55 = vld [vmem:[#allocation8 + $0x58] sm:$0xff]  }
  0x75   :  { %2082 = vmatpush3.bf16.msra.mxu1 %v2314_v56  ;;  %1980 = vmatprep.subr.bf16.mxu0 %v2315_v57  ;;  %v2337_v56 = vld [vmem:[#allocation8 + $0x50] sm:$0xff]   ;;  %v2338_v57 = vld [vmem:[#allocation8 + $0x48] sm:$0xff]  }
  0x76   :  { %2083 = vmatprep.subr.bf16.mxu1 %v2571_v39 }
  0x78   :  { %1981 = vmatpush3.bf16.msra.mxu0 %v2316_v58  ;;  %v2339_v58 = vld [vmem:[#allocation8 + $0x40] sm:$0xff]  }
  0x79   :  { %2084 = vmatpush3.bf16.msra.mxu1 %v2317_v59  ;;  %1982 = vmatprep.subr.bf16.mxu0 %v2318_v61  ;;  %v1846_v59 = vld [vmem:[%s2759_s4] ss:$0 sm:$0xff] }
  0x7a   :  { %2085 = vmatprep.subr.bf16.mxu1 %v2571_v39 }
  0x7c   :  { %1983 = vmatpush3.bf16.msra.mxu0 %v2319_v63 }
  0x7d   :  { %2086 = vmatpush3.bf16.msra.mxu1 %v2320_v0  ;;  %2091 = vmatprep.subr.bf16.mxu0 %v2571_v39 }
  0x7e   :  { %2111 = vmatprep.subr.bf16.mxu1 %v2571_v39 }
  0x7f   :  { %689 = vmatmul.mubr.bf16.vlgmr.msra.gmra.mxu0 %v1787_v2 }
  0x80   :  { %2088 = vmatmul.mubr.bf16.vlgmr.msra.gmra.mxu1 %v2323_v1  ;;  %2107 = vmatprep.mubr.msk.bf16.mxu0 %vm2572_vm0, %v2571_v39 }
  0x81   :  { %2127 = vmatprep.mubr.msk.bf16.mxu1 %vm2572_vm0, %v2571_v39  ;;  %2092 = vmatpush3.bf16.msra.mxu0 %v2324_v3 }
  0x82   :  { %2093 = vmatprep.subr.bf16.mxu0 %v2571_v39  ;;  %2112 = vmatpush3.bf16.msra.mxu1 %v2332_v51  ;;  %v2353_v51 = vld [vmem:[#allocation8 + $0xd0] sm:$0xff]  }
  0x83   :  { %2113 = vmatprep.subr.bf16.mxu1 %v2571_v39 }
  0x85   :  { %2094 = vmatpush3.bf16.msra.mxu0 %v2325_v4 }
  0x86   :  { %2095 = vmatprep.subr.bf16.mxu0 %v2571_v39  ;;  %2114 = vmatpush3.bf16.msra.mxu1 %v2333_v52  ;;  %v2354_v52 = vld [vmem:[#allocation8 + $0xc8] sm:$0xff]  }
  0x87   :  { %2115 = vmatprep.subr.bf16.mxu1 %v2571_v39 }
  0x89   :  { %2096 = vmatpush3.bf16.msra.mxu0 %v2326_v5 }
  0x8a   :  { %2097 = vmatprep.subr.bf16.mxu0 %v2571_v39  ;;  %2116 = vmatpush3.bf16.msra.mxu1 %v2334_v53  ;;  %v2355_v53 = vld [vmem:[#allocation8 + $0xc0] sm:$0xff]  }
  0x8b   :  { %2117 = vmatprep.subr.bf16.mxu1 %v2571_v39 }
  0x8d   :  { %2098 = vmatpush3.bf16.msra.mxu0 %v2327_v6 }
  0x8e   :  { %2099 = vmatprep.subr.bf16.mxu0 %v2571_v39  ;;  %2118 = vmatpush3.bf16.msra.mxu1 %v2335_v54  ;;  %v1866_v54 = vld [vmem:[%s2759_s4 + $0x2] ss:$0 sm:$0xff] }
  0x8f   :  { %2119 = vmatprep.subr.bf16.mxu1 %v2571_v39 }
  0x91   :  { %2100 = vmatpush3.bf16.msra.mxu0 %v2328_v7 }
  0x92   :  { %2101 = vmatprep.subr.bf16.mxu0 %v2571_v39  ;;  %2120 = vmatpush3.bf16.msra.mxu1 %v2336_v55 }
  0x93   :  { %2121 = vmatprep.subr.bf16.mxu1 %v2571_v39 }
  0x95   :  { %2102 = vmatpush3.bf16.msra.mxu0 %v2329_v8 }
  0x96   :  { %2103 = vmatprep.subr.bf16.mxu0 %v2571_v39  ;;  %2122 = vmatpush3.bf16.msra.mxu1 %v2337_v56 }
  0x97   :  { %2123 = vmatprep.subr.bf16.mxu1 %v2571_v39 }
  0x99   :  { %2104 = vmatpush3.bf16.msra.mxu0 %v2330_v9 }
  0x9a   :  { %2105 = vmatprep.subr.bf16.mxu0 %v2571_v39  ;;  %2124 = vmatpush3.bf16.msra.mxu1 %v2338_v57 }
  0x9b   :  { %2125 = vmatprep.subr.bf16.mxu1 %v2571_v39 }
  0x9d   :  { %2106 = vmatpush3.bf16.msra.mxu0 %v2331_v10 }
  0x9e   :  { %2131 = vmatprep.subr.bf16.mxu0 %v2571_v39  ;;  %2126 = vmatpush3.bf16.msra.mxu1 %v2339_v58 }
  0x9f   :  { %2151 = vmatprep.subr.bf16.mxu1 %v2571_v39 }
 0x11f   :  { %v1940_v11 = vpop.f32.mrf.mxu0 }
 0x120   :  { %v1962_v12 = vpop.f32.mrf.mxu1 }
 0x121   :  { %v1941_v13 = vpop.f32.mrf.mxu0 }
 0x122   :  { %v1963_v14 = vpop.f32.mrf.mxu1  ;;  %v1942_v19 = vadd.f32 %v1941_v13, %v1940_v11 }
 0x123   :  { %v1943_v15 = vpop.f32.mrf.mxu0  ;;  %v1964_v22 = vadd.f32 %v1963_v14, %v1962_v12 }
 0x124   :  { %v1965_v16 = vpop.f32.mrf.mxu1  ;;  %v611_v21 = vadd.f32 %v1942_v19, %v1782_v20  ;;  %v2343_v19 = vld [vmem:[#allocation8 + $0xa0] sm:$0xff]   ;;  %v2344_v20 = vld [vmem:[#allocation8 + $0x98] sm:$0xff]  }
 0x125   :  { %v1944_v17 = vpop.f32.mrf.mxu0  ;;  %v2340_v16 = vld [vmem:[#allocation8 + $0xb8] sm:$0xff]  }
 0x126   :  { %v1966_v18 = vpop.f32.mrf.mxu1  ;;  %v651_v26 = vadd.f32 %v1964_v22, %v611_v21  ;;  %v2341_v17 = vld [vmem:[#allocation8 + $0xb0] sm:$0xff]   ;;  %v2346_v22 = vld [vmem:[#allocation8 + $0x88] sm:$0xff]  }
 0x127   :  { %v2342_v18 = vld [vmem:[#allocation8 + $0xa8] sm:$0xff]   ;;  %v2345_v21 = vld [vmem:[#allocation8 + $0x90] sm:$0xff]  }
 0x13f   :  { %v1984_v23 = vpop.f32.mrf.mxu0 }
 0x140   :  { %v730_v24 = vpop.f32.mrf.mxu1 }
 0x141   :  { %v1985_v25 = vpop.f32.mrf.mxu0 }
 0x142   :  { %v1986_v27 = vadd.f32 %v1985_v25, %v1984_v23  ;;  %v2089_v28 = vpop.f32.mrf.mxu1  ;;  %v2347_v23 = vld [vmem:[#allocation8 + $0x80] sm:$0xff]  }
 0x143   :  { %v1987_v29 = vpop.f32.mrf.mxu0 }
 0x144   :  { %v691_v30 = vadd.f32 %v1986_v27, %v651_v26  ;;  %v733_v31 = vpop.f32.mrf.mxu1 }
 0x145   :  { %v1988_v32 = vpop.f32.mrf.mxu0 }
 0x146   :  { %v731_v33 = vadd.f32 %v730_v24, %v691_v30  ;;  %v2090_v34 = vpop.f32.mrf.mxu1  ;;  %v1856_v24 = vld [vmem:[%s2759_s4 + $0x1] ss:$0 sm:$0xff] }
 0x148   :  { %v736_v35 = vsub.f32 0.0, %v731_v33 }
 0x14a   :  { %v737_v36 = vmul.f32 1.442695, %v736_v35 }
 0x14c   :  { %2388 = vpow2.f32 %v737_v36 }
 0x159   :  { %v2389_v37 = vpop.eup %2388 }
 0x15a   :  { %v739_v38 = vadd.f32 1.0, %v2389_v37 }
 0x15c   :  { %2390 = vrcp.f32 %v739_v38 }
 0x169   :  { %v2391_v40 = vpop.eup %2390 }
 0x16a   :  { %v741_v41 = vadd.f32 1.0, %v2391_v40  ;;  %v744_v42 = vmul.f32 -0.5, %v2391_v40  ;;  %v747_v44 = vand.u32 2147483647, %v2391_v40 }
 0x16c   :  { %2392 = vlog2.f32 %v741_v41  ;;  %v745_v43 = vadd.f32 1.0, %v744_v42  ;;  %vm748_vm1 = vcmp.lt.f32.partialorder %v747_v44, 0.0004427343 }
 0x16e   :  { %v746_v47 = vmul.f32 %v2391_v40, %v745_v43 }
 0x179   :  { %v2393_v45 = vpop.eup %2392 }
 0x17a   :  { %v743_v46 = vmul.f32 0.6931472, %v2393_v45 }
 0x17c   :  { %v749_v48 = vsel %vm748_vm1, %v746_v47, %v743_v46  ;;  %v2348_v46 = vld [vmem:[#allocation8 + $0xf8] sm:$0xff]   ;;  %v2349_v47 = vld [vmem:[#allocation8 + $0xf0] sm:$0xff]  }
 0x17d   :  { %v750_v49 = vmul.f32 %v749_v48, %v731_v33  ;;  %v2350_v48 = vld [vmem:[#allocation8 + $0xe8] sm:$0xff]  }
 0x17f   :  { %v751_v50 = vpack.c.bf16 %v750_v49, %v750_v49  ;;  %v2351_v49 = vld [vmem:[#allocation8 + $0xe0] sm:$0xff]  }
 0x181   :  { %2108 = vmatmul.mubr.bf16.vlgmr.msra.gmra.mxu0 %v751_v50  ;;  %v2352_v50 = vld [vmem:[#allocation8 + $0xd8] sm:$0xff]  }
 0x182   :  { %2147 = vmatprep.mubr.msk.bf16.mxu0 %vm2572_vm0, %v2571_v39  ;;  %2132 = vmatpush3.bf16.msra.mxu0 %v2340_v16  ;;  %v2361_v16 = vld [vmem:[#allocation8 + $0x110] sm:$0xff]  }
 0x183   :  { %2133 = vmatprep.subr.bf16.mxu0 %v2571_v39 }
 0x186   :  { %2134 = vmatpush3.bf16.msra.mxu0 %v2341_v17  ;;  %v2362_v17 = vld [vmem:[#allocation8 + $0x108] sm:$0xff]  }
 0x187   :  { %2135 = vmatprep.subr.bf16.mxu0 %v2571_v39 }
 0x18a   :  { %2136 = vmatpush3.bf16.msra.mxu0 %v2342_v18  ;;  %v2363_v18 = vld [vmem:[#allocation8 + $0x100] sm:$0xff]  }
 0x18b   :  { %2137 = vmatprep.subr.bf16.mxu0 %v2571_v39 }
 0x18e   :  { %2138 = vmatpush3.bf16.msra.mxu0 %v2343_v19  ;;  %v1876_v19 = vld [vmem:[%s2759_s4 + $0x3] ss:$0 sm:$0xff] }
 0x18f   :  { %2139 = vmatprep.subr.bf16.mxu0 %v2571_v39 }
 0x192   :  { %2140 = vmatpush3.bf16.msra.mxu0 %v2344_v20 }
 0x193   :  { %2141 = vmatprep.subr.bf16.mxu0 %v2571_v39 }
 0x196   :  { %2142 = vmatpush3.bf16.msra.mxu0 %v2345_v21 }
 0x197   :  { %2143 = vmatprep.subr.bf16.mxu0 %v2571_v39 }
 0x19a   :  { %2144 = vmatpush3.bf16.msra.mxu0 %v2346_v22 }
 0x19b   :  { %2145 = vmatprep.subr.bf16.mxu0 %v2571_v39 }
 0x19e   :  { %2146 = vmatpush3.bf16.msra.mxu0 %v2347_v23 }
 0x19f   :  { %2171 = vmatprep.subr.bf16.mxu0 %v2571_v39 }
 0x241   :  { %v857_v60 = vpop.f32.mrf.mxu0 }
 0x242   :  { %v858_v61 = vadd.f32 %v1846_v59, %v857_v60 }
 0x243   :  { %v2109_v62 = vpop.f32.mrf.mxu0 }
 0x244   :  { %v863_v63 = vsub.f32 0.0, %v858_v61 }
 0x245   :  { %v860_v0 = vpop.f32.mrf.mxu0 }
 0x246   :  { %v864_v1 = vmul.f32 1.442695, %v863_v63 }
 0x247   :  { %v2110_v2 = vpop.f32.mrf.mxu0 }
 0x248   :  { %2394 = vpow2.f32 %v864_v1 }
 0x255   :  { %v2395_v3 = vpop.eup %2394 }
 0x256   :  { %v866_v4 = vadd.f32 1.0, %v2395_v3 }
 0x258   :  { %2396 = vrcp.f32 %v866_v4 }
 0x265   :  { %v2397_v5 = vpop.eup %2396 }
 0x266   :  { %v868_v6 = vadd.f32 1.0, %v2397_v5  ;;  %v871_v7 = vmul.f32 -0.5, %v2397_v5  ;;  %v874_v9 = vand.u32 2147483647, %v2397_v5 }
 0x268   :  { %2398 = vlog2.f32 %v868_v6  ;;  %v872_v8 = vadd.f32 1.0, %v871_v7  ;;  %vm875_vm2 = vcmp.lt.f32.partialorder %v874_v9, 0.0004427343 }
 0x26a   :  { %v873_v12 = vmul.f32 %v2397_v5, %v872_v8 }
 0x275   :  { %v2399_v10 = vpop.eup %2398 }
 0x276   :  { %v870_v11 = vmul.f32 0.6931472, %v2399_v10 }
 0x278   :  { %v876_v13 = vsel %vm875_vm2, %v873_v12, %v870_v11  ;;  %v2356_v11 = vld [vmem:[#allocation8 + $0x138] sm:$0xff]   ;;  %v2357_v12 = vld [vmem:[#allocation8 + $0x130] sm:$0xff]  }
 0x279   :  { %v877_v14 = vmul.f32 %v876_v13, %v858_v61  ;;  %v2358_v13 = vld [vmem:[#allocation8 + $0x128] sm:$0xff]  }
 0x27b   :  { %v878_v15 = vpack.c.bf16 %v877_v14, %v877_v14  ;;  %v2359_v14 = vld [vmem:[#allocation8 + $0x120] sm:$0xff]  }
 0x27d   :  { %2128 = vmatmul.mubr.bf16.vlgmr.msra.gmra.mxu1 %v878_v15  ;;  %v2360_v15 = vld [vmem:[#allocation8 + $0x118] sm:$0xff]  }
 0x27e   :  { %2167 = vmatprep.mubr.msk.bf16.mxu1 %vm2572_vm0, %v2571_v39  ;;  %2152 = vmatpush3.bf16.msra.mxu1 %v2348_v46  ;;  %v2369_v46 = vld [vmem:[#allocation8 + $0x150] sm:$0xff]  }
 0x27f   :  { %2153 = vmatprep.subr.bf16.mxu1 %v2571_v39 }
 0x282   :  { %2154 = vmatpush3.bf16.msra.mxu1 %v2349_v47  ;;  %v2370_v47 = vld [vmem:[#allocation8 + $0x148] sm:$0xff]  }
 0x283   :  { %2155 = vmatprep.subr.bf16.mxu1 %v2571_v39 }
 0x286   :  { %2156 = vmatpush3.bf16.msra.mxu1 %v2350_v48  ;;  %v2371_v48 = vld [vmem:[#allocation8 + $0x140] sm:$0xff]  }
 0x287   :  { %2157 = vmatprep.subr.bf16.mxu1 %v2571_v39 }
 0x28a   :  { %2158 = vmatpush3.bf16.msra.mxu1 %v2351_v49  ;;  %v1886_v49 = vld [vmem:[%s2759_s4 + $0x4] ss:$0 sm:$0xff] }
 0x28b   :  { %2159 = vmatprep.subr.bf16.mxu1 %v2571_v39 }
 0x28e   :  { %2160 = vmatpush3.bf16.msra.mxu1 %v2352_v50 }
 0x28f   :  { %2161 = vmatprep.subr.bf16.mxu1 %v2571_v39 }
 0x292   :  { %2162 = vmatpush3.bf16.msra.mxu1 %v2353_v51 }
 0x293   :  { %2163 = vmatprep.subr.bf16.mxu1 %v2571_v39 }
 0x296   :  { %2164 = vmatpush3.bf16.msra.mxu1 %v2354_v52 }
 0x297   :  { %2165 = vmatprep.subr.bf16.mxu1 %v2571_v39 }
 0x29a   :  { %2166 = vmatpush3.bf16.msra.mxu1 %v2355_v53 }
 0x29b   :  { %2191 = vmatprep.subr.bf16.mxu1 %v2571_v39 }
 0x33d   :  { %v986_v25 = vpop.f32.mrf.mxu1 }
 0x33e   :  { %v987_v26 = vadd.f32 %v1856_v24, %v986_v25 }
 0x33f   :  { %v2129_v27 = vpop.f32.mrf.mxu1 }
 0x340   :  { %v992_v28 = vsub.f32 0.0, %v987_v26 }
 0x341   :  { %v989_v29 = vpop.f32.mrf.mxu1 }
 0x342   :  { %v993_v30 = vmul.f32 1.442695, %v992_v28 }
 0x343   :  { %v2130_v31 = vpop.f32.mrf.mxu1 }
 0x344   :  { %2400 = vpow2.f32 %v993_v30 }
 0x351   :  { %v2401_v32 = vpop.eup %2400 }
 0x352   :  { %v995_v33 = vadd.f32 1.0, %v2401_v32 }
 0x354   :  { %2402 = vrcp.f32 %v995_v33 }
 0x361   :  { %v2403_v34 = vpop.eup %2402 }
 0x362   :  { %v997_v35 = vadd.f32 1.0, %v2403_v34  ;;  %v1000_v36 = vmul.f32 -0.5, %v2403_v34  ;;  %v1003_v38 = vand.u32 2147483647, %v2403_v34 }
 0x364   :  { %2404 = vlog2.f32 %v997_v35  ;;  %v1001_v37 = vadd.f32 1.0, %v1000_v36  ;;  %vm1004_vm3 = vcmp.lt.f32.partialorder %v1003_v38, 0.0004427343 }
 0x366   :  { %v1002_v42 = vmul.f32 %v2403_v34, %v1001_v37 }
 0x371   :  { %v2405_v40 = vpop.eup %2404 }
 0x372   :  { %v999_v41 = vmul.f32 0.6931472, %v2405_v40 }
 0x374   :  { %v1005_v43 = vsel %vm1004_vm3, %v1002_v42, %v999_v41  ;;  %v2364_v41 = vld [vmem:[#allocation8 + $0x178] sm:$0xff]   ;;  %v2365_v42 = vld [vmem:[#allocation8 + $0x170] sm:$0xff]  }
 0x375   :  { %v1006_v44 = vmul.f32 %v1005_v43, %v987_v26  ;;  %v2366_v43 = vld [vmem:[#allocation8 + $0x168] sm:$0xff]  }
 0x377   :  { %v1007_v45 = vpack.c.bf16 %v1006_v44, %v1006_v44  ;;  %v2367_v44 = vld [vmem:[#allocation8 + $0x160] sm:$0xff]  }
 0x379   :  { %2148 = vmatmul.mubr.bf16.vlgmr.msra.gmra.mxu0 %v1007_v45  ;;  %v2368_v45 = vld [vmem:[#allocation8 + $0x158] sm:$0xff]  }
 0x37a   :  { %2187 = vmatprep.mubr.msk.bf16.mxu0 %vm2572_vm0, %v2571_v39  ;;  %2172 = vmatpush3.bf16.msra.mxu0 %v2356_v11  ;;  %v2377_v11 = vld [vmem:[#allocation8 + $0x190] sm:$0xff]  }
 0x37b   :  { %2173 = vmatprep.subr.bf16.mxu0 %v2571_v39 }
 0x37e   :  { %2174 = vmatpush3.bf16.msra.mxu0 %v2357_v12  ;;  %v2378_v12 = vld [vmem:[#allocation8 + $0x188] sm:$0xff]  }
 0x37f   :  { %2175 = vmatprep.subr.bf16.mxu0 %v2571_v39 }
 0x382   :  { %2176 = vmatpush3.bf16.msra.mxu0 %v2358_v13  ;;  %v2379_v13 = vld [vmem:[#allocation8 + $0x180] sm:$0xff]  }
 0x383   :  { %2177 = vmatprep.subr.bf16.mxu0 %v2571_v39 }
 0x386   :  { %2178 = vmatpush3.bf16.msra.mxu0 %v2359_v14  ;;  %v1896_v14 = vld [vmem:[%s2759_s4 + $0x5] ss:$0 sm:$0xff] }
 0x387   :  { %2179 = vmatprep.subr.bf16.mxu0 %v2571_v39 }
 0x38a   :  { %2180 = vmatpush3.bf16.msra.mxu0 %v2360_v15 }
 0x38b   :  { %2181 = vmatprep.subr.bf16.mxu0 %v2571_v39 }
 0x38e   :  { %2182 = vmatpush3.bf16.msra.mxu0 %v2361_v16 }
 0x38f   :  { %2183 = vmatprep.subr.bf16.mxu0 %v2571_v39 }
 0x392   :  { %2184 = vmatpush3.bf16.msra.mxu0 %v2362_v17 }
 0x393   :  { %2185 = vmatprep.subr.bf16.mxu0 %v2571_v39 }
 0x396   :  { %2186 = vmatpush3.bf16.msra.mxu0 %v2363_v18 }
 0x397   :  { %2211 = vmatprep.subr.bf16.mxu0 %v2571_v39 }
 0x439   :  { %v1115_v55 = vpop.f32.mrf.mxu0 }
 0x43a   :  { %v1116_v56 = vadd.f32 %v1866_v54, %v1115_v55 }
 0x43b   :  { %v2149_v57 = vpop.f32.mrf.mxu0 }
 0x43c   :  { %v1121_v58 = vsub.f32 0.0, %v1116_v56 }
 0x43d   :  { %v1118_v59 = vpop.f32.mrf.mxu0 }
 0x43e   :  { %v1122_v60 = vmul.f32 1.442695, %v1121_v58 }
 0x43f   :  { %v2150_v61 = vpop.f32.mrf.mxu0 }
 0x440   :  { %2406 = vpow2.f32 %v1122_v60 }
 0x44d   :  { %v2407_v62 = vpop.eup %2406 }
 0x44e   :  { %v1124_v63 = vadd.f32 1.0, %v2407_v62 }
 0x450   :  { %2408 = vrcp.f32 %v1124_v63 }
 0x45d   :  { %v2409_v0 = vpop.eup %2408 }
 0x45e   :  { %v1126_v1 = vadd.f32 1.0, %v2409_v0  ;;  %v1129_v2 = vmul.f32 -0.5, %v2409_v0  ;;  %v1132_v4 = vand.u32 2147483647, %v2409_v0 }
 0x460   :  { %2410 = vlog2.f32 %v1126_v1  ;;  %v1130_v3 = vadd.f32 1.0, %v1129_v2  ;;  %vm1133_vm4 = vcmp.lt.f32.partialorder %v1132_v4, 0.0004427343 }
 0x462   :  { %v1131_v7 = vmul.f32 %v2409_v0, %v1130_v3 }
 0x46d   :  { %v2411_v5 = vpop.eup %2410 }
 0x46e   :  { %v1128_v6 = vmul.f32 0.6931472, %v2411_v5 }
 0x470   :  { %v1134_v8 = vsel %vm1133_vm4, %v1131_v7, %v1128_v6  ;;  %v2372_v6 = vld [vmem:[#allocation8 + $0x1b8] sm:$0xff]   ;;  %v2373_v7 = vld [vmem:[#allocation8 + $0x1b0] sm:$0xff]  }
 0x471   :  { %v1135_v9 = vmul.f32 %v1134_v8, %v1116_v56  ;;  %v2374_v8 = vld [vmem:[#allocation8 + $0x1a8] sm:$0xff]  }
 0x473   :  { %v1136_v10 = vpack.c.bf16 %v1135_v9, %v1135_v9  ;;  %v2375_v9 = vld [vmem:[#allocation8 + $0x1a0] sm:$0xff]  }
 0x475   :  { %2168 = vmatmul.mubr.bf16.vlgmr.msra.gmra.mxu1 %v1136_v10  ;;  %v2376_v10 = vld [vmem:[#allocation8 + $0x198] sm:$0xff]  }
 0x476   :  { %2207 = vmatprep.mubr.msk.bf16.mxu1 %vm2572_vm0, %v2571_v39  ;;  %2192 = vmatpush3.bf16.msra.mxu1 %v2364_v41  ;;  %v2385_v41 = vld [vmem:[#allocation10 + $0x10] sm:$0xff]  }
 0x477   :  { %2193 = vmatprep.subr.bf16.mxu1 %v2571_v39 }
 0x47a   :  { %2194 = vmatpush3.bf16.msra.mxu1 %v2365_v42  ;;  %v2386_v42 = vld [vmem:[#allocation10 + $0x8] sm:$0xff]  }
 0x47b   :  { %2195 = vmatprep.subr.bf16.mxu1 %v2571_v39 }
 0x47e   :  { %2196 = vmatpush3.bf16.msra.mxu1 %v2366_v43  ;;  %v2387_v43 = vld [vmem:[#allocation10] sm:$0xff]  }
 0x47f   :  { %2197 = vmatprep.subr.bf16.mxu1 %v2571_v39 }
 0x482   :  { %2198 = vmatpush3.bf16.msra.mxu1 %v2367_v44  ;;  %v1906_v44 = vld [vmem:[%s2759_s4 + $0x6] ss:$0 sm:$0xff] }
 0x483   :  { %2199 = vmatprep.subr.bf16.mxu1 %v2571_v39 }
 0x486   :  { %2200 = vmatpush3.bf16.msra.mxu1 %v2368_v45 }
 0x487   :  { %2201 = vmatprep.subr.bf16.mxu1 %v2571_v39 }
 0x48a   :  { %2202 = vmatpush3.bf16.msra.mxu1 %v2369_v46 }
 0x48b   :  { %2203 = vmatprep.subr.bf16.mxu1 %v2571_v39 }
 0x48e   :  { %2204 = vmatpush3.bf16.msra.mxu1 %v2370_v47 }
 0x48f   :  { %2205 = vmatprep.subr.bf16.mxu1 %v2571_v39 }
 0x492   :  { %2206 = vmatpush3.bf16.msra.mxu1 %v2371_v48 }
 0x493   :  { %2231 = vmatprep.subr.bf16.mxu1 %v2571_v39 }
 0x535   :  { %v1244_v20 = vpop.f32.mrf.mxu1 }
 0x536   :  { %v1245_v21 = vadd.f32 %v1876_v19, %v1244_v20 }
 0x537   :  { %v2169_v22 = vpop.f32.mrf.mxu1 }
 0x538   :  { %v1250_v23 = vsub.f32 0.0, %v1245_v21 }
 0x539   :  { %v1247_v24 = vpop.f32.mrf.mxu1 }
 0x53a   :  { %v1251_v25 = vmul.f32 1.442695, %v1250_v23 }
 0x53b   :  { %v2170_v26 = vpop.f32.mrf.mxu1 }
 0x53c   :  { %2412 = vpow2.f32 %v1251_v25 }
 0x549   :  { %v2413_v27 = vpop.eup %2412 }
 0x54a   :  { %v1253_v28 = vadd.f32 1.0, %v2413_v27 }
 0x54c   :  { %2414 = vrcp.f32 %v1253_v28 }
 0x559   :  { %v2415_v29 = vpop.eup %2414 }
 0x55a   :  { %v1255_v30 = vadd.f32 1.0, %v2415_v29  ;;  %v1258_v31 = vmul.f32 -0.5, %v2415_v29  ;;  %v1261_v33 = vand.u32 2147483647, %v2415_v29 }
 0x55c   :  { %2416 = vlog2.f32 %v1255_v30  ;;  %v1259_v32 = vadd.f32 1.0, %v1258_v31  ;;  %vm1262_vm5 = vcmp.lt.f32.partialorder %v1261_v33, 0.0004427343 }
 0x55e   :  { %v1260_v36 = vmul.f32 %v2415_v29, %v1259_v32 }
 0x569   :  { %v2417_v34 = vpop.eup %2416 }
 0x56a   :  { %v1257_v35 = vmul.f32 0.6931472, %v2417_v34 }
 0x56c   :  { %v1263_v37 = vsel %vm1262_vm5, %v1260_v36, %v1257_v35  ;;  %v2380_v35 = vld [vmem:[#allocation10 + $0x38] sm:$0xff]   ;;  %v2381_v36 = vld [vmem:[#allocation10 + $0x30] sm:$0xff]  }
 0x56d   :  { %v1264_v38 = vmul.f32 %v1263_v37, %v1245_v21  ;;  %v2382_v37 = vld [vmem:[#allocation10 + $0x28] sm:$0xff]  }
 0x56f   :  { %v1265_v40 = vpack.c.bf16 %v1264_v38, %v1264_v38  ;;  %v2383_v38 = vld [vmem:[#allocation10 + $0x20] sm:$0xff]  }
 0x571   :  { %2188 = vmatmul.mubr.bf16.vlgmr.msra.gmra.mxu0 %v1265_v40  ;;  %v2384_v40 = vld [vmem:[#allocation10 + $0x18] sm:$0xff]  }
 0x572   :  { %2227 = vmatprep.mubr.msk.bf16.mxu0 %vm2572_vm0, %v2571_v39  ;;  %2212 = vmatpush3.bf16.msra.mxu0 %v2372_v6 }
 0x573   :  { %2213 = vmatprep.subr.bf16.mxu0 %v2571_v39 }
 0x576   :  { %2214 = vmatpush3.bf16.msra.mxu0 %v2373_v7 }
 0x577   :  { %2215 = vmatprep.subr.bf16.mxu0 %v2571_v39 }
 0x57a   :  { %2216 = vmatpush3.bf16.msra.mxu0 %v2374_v8 }
 0x57b   :  { %2217 = vmatprep.subr.bf16.mxu0 %v2571_v39 }
 0x57e   :  { %2218 = vmatpush3.bf16.msra.mxu0 %v2375_v9 }
 0x57f   :  { %2219 = vmatprep.subr.bf16.mxu0 %v2571_v39 }
 0x582   :  { %2220 = vmatpush3.bf16.msra.mxu0 %v2376_v10 }
 0x583   :  { %2221 = vmatprep.subr.bf16.mxu0 %v2571_v39 }
 0x586   :  { %2222 = vmatpush3.bf16.msra.mxu0 %v2377_v11 }
 0x587   :  { %2223 = vmatprep.subr.bf16.mxu0 %v2571_v39 }
 0x58a   :  { %2224 = vmatpush3.bf16.msra.mxu0 %v2378_v12 }
 0x58b   :  { %2225 = vmatprep.subr.bf16.mxu0 %v2571_v39 }
 0x58e   :  { %2226 = vmatpush3.bf16.msra.mxu0 %v2379_v13 }
 0x631   :  { %v1373_v50 = vpop.f32.mrf.mxu0 }
 0x632   :  { %v1374_v51 = vadd.f32 %v1886_v49, %v1373_v50 }
 0x633   :  { %v2189_v52 = vpop.f32.mrf.mxu0 }
 0x634   :  { %v1379_v53 = vsub.f32 0.0, %v1374_v51 }
 0x635   :  { %v1376_v54 = vpop.f32.mrf.mxu0 }
 0x636   :  { %v1380_v55 = vmul.f32 1.442695, %v1379_v53 }
 0x637   :  { %v2190_v56 = vpop.f32.mrf.mxu0 }
 0x638   :  { %2418 = vpow2.f32 %v1380_v55 }
 0x645   :  { %v2419_v57 = vpop.eup %2418 }
 0x646   :  { %v1382_v58 = vadd.f32 1.0, %v2419_v57 }
 0x648   :  { %2420 = vrcp.f32 %v1382_v58 }
 0x655   :  { %v2421_v59 = vpop.eup %2420 }
 0x656   :  { %v1384_v60 = vadd.f32 1.0, %v2421_v59  ;;  %v1387_v61 = vmul.f32 -0.5, %v2421_v59  ;;  %v1390_v63 = vand.u32 2147483647, %v2421_v59 }
 0x658   :  { %2422 = vlog2.f32 %v1384_v60  ;;  %v1388_v62 = vadd.f32 1.0, %v1387_v61  ;;  %vm1391_vm6 = vcmp.lt.f32.partialorder %v1390_v63, 0.0004427343 }
 0x65a   :  { %v1389_v2 = vmul.f32 %v2421_v59, %v1388_v62 }
 0x665   :  { %v2423_v0 = vpop.eup %2422 }
 0x666   :  { %v1386_v1 = vmul.f32 0.6931472, %v2423_v0  ;;  %v1915_v0 = vld [vmem:[%s2761_s6] ss:$0 sm:$0xff] }
 0x668   :  { %v1392_v3 = vsel %vm1391_vm6, %v1389_v2, %v1386_v1 }
 0x669   :  { %v1393_v4 = vmul.f32 %v1392_v3, %v1374_v51 }
 0x66b   :  { %v1394_v5 = vpack.c.bf16 %v1393_v4, %v1393_v4 }
 0x66d   :  { %2208 = vmatmul.mubr.bf16.vlgmr.msra.gmra.mxu1 %v1394_v5 }
 0x66e   :  { %2247 = vmatprep.mubr.msk.bf16.mxu1 %vm2572_vm0, %v2571_v39  ;;  %2232 = vmatpush3.bf16.msra.mxu1 %v2380_v35 }
 0x66f   :  { %2233 = vmatprep.subr.bf16.mxu1 %v2571_v39 }
 0x672   :  { %2234 = vmatpush3.bf16.msra.mxu1 %v2381_v36 }
 0x673   :  { %2235 = vmatprep.subr.bf16.mxu1 %v2571_v39 }
 0x676   :  { %2236 = vmatpush3.bf16.msra.mxu1 %v2382_v37 }
 0x677   :  { %2237 = vmatprep.subr.bf16.mxu1 %v2571_v39 }
 0x67a   :  { %2238 = vmatpush3.bf16.msra.mxu1 %v2383_v38 }
 0x67b   :  { %2239 = vmatprep.subr.bf16.mxu1 %v2571_v39 }
 0x67e   :  { %2240 = vmatpush3.bf16.msra.mxu1 %v2384_v40 }
 0x67f   :  { %2241 = vmatprep.subr.bf16.mxu1 %v2571_v39 }
 0x682   :  { %2242 = vmatpush3.bf16.msra.mxu1 %v2385_v41 }
 0x683   :  { %2243 = vmatprep.subr.bf16.mxu1 %v2571_v39 }
 0x686   :  { %2244 = vmatpush3.bf16.msra.mxu1 %v2386_v42 }
 0x687   :  { %2245 = vmatprep.subr.bf16.mxu1 %v2571_v39 }
 0x68a   :  { %2246 = vmatpush3.bf16.msra.mxu1 %v2387_v43 }
 0x72d   :  { %v1502_v15 = vpop.f32.mrf.mxu1 }
 0x72e   :  { %v1503_v16 = vadd.f32 %v1896_v14, %v1502_v15 }
 0x72f   :  { %v2209_v17 = vpop.f32.mrf.mxu1 }
 0x730   :  { %v1508_v18 = vsub.f32 0.0, %v1503_v16 }
 0x731   :  { %v1505_v19 = vpop.f32.mrf.mxu1 }
 0x732   :  { %v1509_v20 = vmul.f32 1.442695, %v1508_v18 }
 0x733   :  { %v2210_v21 = vpop.f32.mrf.mxu1 }
 0x734   :  { %2424 = vpow2.f32 %v1509_v20 }
 0x741   :  { %v2425_v22 = vpop.eup %2424 }
 0x742   :  { %v1511_v23 = vadd.f32 1.0, %v2425_v22 }
 0x744   :  { %2426 = vrcp.f32 %v1511_v23 }
 0x751   :  { %v2427_v24 = vpop.eup %2426 }
 0x752   :  { %v1513_v25 = vadd.f32 1.0, %v2427_v24  ;;  %v1516_v26 = vmul.f32 -0.5, %v2427_v24  ;;  %v1519_v28 = vand.u32 2147483647, %v2427_v24 }
 0x754   :  { %2428 = vlog2.f32 %v1513_v25  ;;  %v1517_v27 = vadd.f32 1.0, %v1516_v26  ;;  %vm1520_vm7 = vcmp.lt.f32.partialorder %v1519_v28, 0.0004427343 }
 0x756   :  { %v1518_v31 = vmul.f32 %v2427_v24, %v1517_v27 }
 0x761   :  { %v2429_v29 = vpop.eup %2428 }
 0x762   :  { %v1515_v30 = vmul.f32 0.6931472, %v2429_v29 }
 0x764   :  { %v1521_v32 = vsel %vm1520_vm7, %v1518_v31, %v1515_v30 }
 0x765   :  { %v1522_v33 = vmul.f32 %v1521_v32, %v1503_v16 }
 0x767   :  { %v1523_v34 = vpack.c.bf16 %v1522_v33, %v1522_v33 }
 0x769   :  { %2228 = vmatmul.mubr.bf16.vlgmr.msra.gmra.mxu0 %v1523_v34 }
 0x829   :  { %v1631_v45 = vpop.f32.mrf.mxu0 }
 0x82a   :  { %v1632_v46 = vadd.f32 %v1906_v44, %v1631_v45 }
 0x82b   :  { %v2229_v47 = vpop.f32.mrf.mxu0 }
 0x82c   :  { %v1637_v48 = vsub.f32 0.0, %v1632_v46 }
 0x82d   :  { %v1634_v49 = vpop.f32.mrf.mxu0 }
 0x82e   :  { %v1638_v50 = vmul.f32 1.442695, %v1637_v48 }
 0x82f   :  { %v2230_v51 = vpop.f32.mrf.mxu0 }
 0x830   :  { %2430 = vpow2.f32 %v1638_v50 }
 0x83d   :  { %v2431_v52 = vpop.eup %2430 }
 0x83e   :  { %v1640_v53 = vadd.f32 1.0, %v2431_v52 }
 0x840   :  { %2432 = vrcp.f32 %v1640_v53 }
 0x84d   :  { %v2433_v54 = vpop.eup %2432 }
 0x84e   :  { %v1642_v55 = vadd.f32 1.0, %v2433_v54  ;;  %v1645_v39 = vmul.f32 -0.5, %v2433_v54  ;;  %v1648_v57 = vand.u32 2147483647, %v2433_v54 }
 0x850   :  { %2434 = vlog2.f32 %v1642_v55  ;;  %v1646_v56 = vadd.f32 1.0, %v1645_v39  ;;  %vm1649_vm8 = vcmp.lt.f32.partialorder %v1648_v57, 0.0004427343 }
 0x852   :  { %v1647_v60 = vmul.f32 %v2433_v54, %v1646_v56 }
 0x85d   :  { %v2435_v58 = vpop.eup %2434 }
 0x85e   :  { %v1644_v59 = vmul.f32 0.6931472, %v2435_v58 }
 0x860   :  { %v1650_v61 = vsel %vm1649_vm8, %v1647_v60, %v1644_v59 }
 0x861   :  { %v1651_v62 = vmul.f32 %v1650_v61, %v1632_v46 }
 0x863   :  { %v1652_v63 = vpack.c.bf16 %v1651_v62, %v1651_v62 }
 0x865   :  { %2248 = vmatmul.mubr.bf16.vlgmr.msra.gmra.mxu1 %v1652_v63 }
 0x925   :  { %v1758_v1 = vpop.f32.mrf.mxu1 }
 0x926   :  { %v1759_v2 = vadd.f32 %v1915_v0, %v1758_v1 }
 0x927   :  { %v2249_v3 = vpop.f32.mrf.mxu1 }
 0x928   :  { %1764 = vst [vmem:[#allocation11] sm:$0xff] %v1759_v2 }
 0x929   :  { %v1761_v4 = vpop.f32.mrf.mxu1 }
 0x92a   :  { %2547 = shalt.err (!%p2544_p1)
}
 0x92b   :  { %1774 = dma.vmem_to_hbm [thread:$0]  %s1772_s16, 128, %s2762_s7, [#allocation4]   ;;  %v2250_v5 = vpop.f32.mrf.mxu1 }
 0x92c   :  { %2562 = dma.done.wait [#allocation4], 128  }
 0x92d   :  { %2563 = vsyncadd [#allocation4], 4294967168 }
 0x92e   :  { %1778 = vsyncpa [#allocation3], 1 }
 0x92f   :  { %1779 = vsyncpa [#allocation6], 1 }
 0x930   :  { %1780 = vsyncpa [#allocation9], 1 }
 0x931   :  { %1781 = vsyncpa [#allocation4], 1 }

</bundles_post_ra>
